<compile_context>
chip_gen: v7x
topology: tpu7x:2x2x1
jax: 0.10.0
libtpu: 0.0.40
codegen_flags: <defaults>
</compile_context>

<pallas_src>
import functools

import jax
import jax.numpy as jnp
from jax.experimental import pallas as pl
from jax.experimental.pallas import tpu as pltpu

LANE = 128
SINGLE_TILE_MAX_BATCH = 2048          # below this, one batch tile / grid=(1,)
SINGLE_BUFFER_WEIGHT_BYTES = 4 << 20  # only bother single-buffering big weights


def _round_up(x: int, m: int) -> int:
    return ((x + m - 1) // m) * m


def _preferred_batch_tile() -> int:
    """Generation-aware batch tile for the large-batch tiled path.

    v5e MXU is 4x128^2 -> 128-row tiles; v6e/v7x MXUs are 2x256^2 -> 256-row
    tiles feed the full systolic height per pass.
    """
    try:
        kind = jax.devices()[0].device_kind.lower()
    except Exception:  # pragma: no cover - conservative fallback
        return 128
    return 128 if "v5" in kind else 256


def make_mlp_kernel(num_layers: int, apply_sigmoid: bool):
    """Fused MLP forward kernel.

    Kernel signature: (x_ref, w0, b0, w1, b1, ..., out_ref)
      h = relu(h @ W_i + b_i) for hidden layers (bf16 MXU operands, f32 accum),
      linear final layer, optional numerically-stable sigmoid head.
    """

    def kernel(*refs):
        x_ref = refs[0]
        out_ref = refs[-1]
        param_refs = refs[1:-1]

        # x arrives as f32; cast to bf16 in-kernel (VPU) for MXU operands.
        h_bf16 = x_ref[...].astype(jnp.bfloat16)
        acc = None
        for i in range(num_layers):
            w = param_refs[2 * i][...]          # bf16 [in_pad, out_pad]
            b = param_refs[2 * i + 1][...]      # f32  [1, out_pad]
            # MXU matmul on bf16 operands with f32 accumulation, VPU bias add.
            acc = jnp.dot(h_bf16, w, preferred_element_type=jnp.float32) + b
            if i < num_layers - 1:
                acc = jnp.maximum(acc, 0.0)     # ReLU (f32 VPU)
                h_bf16 = acc.astype(jnp.bfloat16)

        if apply_sigmoid:
            # Stable sigmoid: exp argument is always <= 0 (never overflows).
            #   sigmoid(|x|)  = 1 / (1 + e),  sigmoid(-|x|) = e / (1 + e),
            # with e = exp(-|x|) in (0, 1].  exp + reciprocal use the EUP slot.
            e = jnp.exp(-jnp.abs(acc))
            r = pl.reciprocal(1.0 + e, approx=True)
            acc = jnp.where(acc >= 0.0, r, e * r)

        out_ref[...] = acc.astype(out_ref.dtype)

    return kernel


def prepare_kernel_params(params):
    """One-time conversion of f32 [in, out] params into kernel format.

    Pads every layer's output width (hidden and head) to a multiple of 128
    lanes, pads the matching input rows of the next layer, and casts weights
    to bf16 / biases to f32 [1, out_pad].  Done once, NOT per forward call.
    """
    prepared = []
    prev_out_pad = None
    for i, (w, b) in enumerate(params):
        fan_in, fan_out = w.shape
        in_pad = fan_in if i == 0 else prev_out_pad
        out_pad = _round_up(max(fan_out, LANE), LANE)
        wj = jnp.zeros((in_pad, out_pad), jnp.float32).at[:fan_in, :fan_out].set(w)
        bj = jnp.zeros((1, out_pad), jnp.float32).at[:, :fan_out].set(b)
        prepared.append((wj.astype(jnp.bfloat16), bj))
        prev_out_pad = out_pad
    return prepared


def _const_full_spec(shape, single_buffer):
    """Full-array, constant-index BlockSpec (VMEM-resident across the grid)."""
    index_map = lambda i: (0,) * len(shape)
    if single_buffer:
        try:
            # Constant block index -> no benefit from double-buffering; halves
            # the resident VMEM footprint of the weights (matters on v7x).
            return pl.BlockSpec(shape, index_map, pipeline_mode=pl.Buffered(1))
        except TypeError:
            pass
    return pl.BlockSpec(shape, index_map)


def neural_network_forward(x, kparams, *, out_dim, apply_sigmoid):
    """Pallas-backed equivalent of NeuralNetwork.forward.

    x:       [batch, input_dim] float32
    kparams: output of prepare_kernel_params (bf16 padded weights, f32 biases)
    """
    num_layers = len(kparams)
    batch, in_dim = x.shape
    out_pad = kparams[-1][0].shape[1]

    # Batch tiling: collapse to a single tile for small batches (per-grid-step
    # overhead ~0.35 us dominates a tiny MLP); otherwise use a generation-aware
    # tile on a "parallel" grid axis (megacore sharding on v7x).
    if batch <= SINGLE_TILE_MAX_BATCH:
        tm = batch
    else:
        tm = _preferred_batch_tile()
    padded_batch = _round_up(batch, tm)
    grid_m = padded_batch // tm

    x_p = x if padded_batch == batch else jnp.pad(
        x, ((0, padded_batch - batch), (0, 0)))

    weight_bytes = sum(
        w.size * w.dtype.itemsize + b.size * b.dtype.itemsize
        for (w, b) in kparams
    )
    single_buffer_weights = weight_bytes > SINGLE_BUFFER_WEIGHT_BYTES

    flat_inputs = [x_p]
    in_specs = [pl.BlockSpec((tm, in_dim), lambda i: (i, 0))]

    flops = 0
    for (w, b) in kparams:
        flat_inputs.append(w)
        flat_inputs.append(b)
        in_specs.append(_const_full_spec(w.shape, single_buffer_weights))
        in_specs.append(_const_full_spec(b.shape, single_buffer_weights))
        flops += 2 * padded_batch * w.shape[0] * w.shape[1]

    out_spec = pl.BlockSpec((tm, out_pad), lambda i: (i, 0))
    out_shape = jax.ShapeDtypeStruct((padded_batch, out_pad), jnp.float32)

    # VMEM budget: resident weights (x1 if single-buffered, x2 otherwise) plus
    # double-buffered x/out tiles plus activation intermediates + headroom.
    max_width = max(w.shape[1] for (w, b) in kparams)
    act_tile_bytes = tm * in_dim * 4 + tm * out_pad * 4
    inter_bytes = 2 * tm * max_width * 4
    needed = (weight_bytes * (1 if single_buffer_weights else 2)
              + 2 * act_tile_bytes + inter_bytes)
    vmem_limit = min(100 << 20, max(needed + (8 << 20), 32 << 20))

    bytes_accessed = (
        x_p.size * x_p.dtype.itemsize
        + weight_bytes
        + padded_batch * out_pad * 4
    )
    transcendentals = padded_batch * out_pad if apply_sigmoid else 0

    kernel = make_mlp_kernel(num_layers, apply_sigmoid)

    # TODO(synk): if total bf16 weights exceed ~20-24 MiB (v7x has only 64 MiB
    # physical VMEM), switch to a trailing "arbitrary" per-layer/K grid axis
    # with an f32 VMEM accumulator scratch + pl.when init/finalize instead of
    # keeping all weights resident.
    out_padded = pl.pallas_call(
        kernel,
        out_shape=out_shape,
        grid=(grid_m,),
        in_specs=in_specs,
        out_specs=out_spec,
        compiler_params=pltpu.CompilerParams(
            dimension_semantics=("parallel",),
            vmem_limit_bytes=int(vmem_limit),
        ),
        cost_estimate=pl.CostEstimate(
            flops=flops,
            transcendentals=transcendentals,
            bytes_accessed=bytes_accessed,
        ),
    )(*flat_inputs)

    return out_padded[:batch, :out_dim]


def init_params(key, input_dim, hidden_layers, problem_type, num_classes):
    """Deterministic init matching the PyTorch module's layer shapes (f32)."""
    dims = [input_dim] + list(hidden_layers)
    if problem_type == "classification":
        out_features = num_classes if num_classes > 1 else 1
    else:
        out_features = 1
    dims.append(out_features)

    params = []
    for i in range(len(dims) - 1):
        fan_in, fan_out = dims[i], dims[i + 1]
        key, wk, bk = jax.random.split(key, 3)
        bound = 1.0 / jnp.sqrt(fan_in)
        # Stored as [in, out] (transposed vs. torch's [out, in]).
        w = jax.random.uniform(wk, (fan_in, fan_out), jnp.float32, -bound, bound)
        b = jax.random.uniform(bk, (fan_out,), jnp.float32, -bound, bound)
        params.append((w, b))
    return params


def reference_forward(x, params, *, problem_type, num_classes):
    h = x
    for i, (w, b) in enumerate(params):
        h = h @ w + b
        if i < len(params) - 1:
            h = jnp.maximum(h, 0.0)
    if problem_type == "classification" and num_classes == 1:
        h = jax.nn.sigmoid(h)
    return h


if __name__ == "__main__":
    # Binary-classification MLP consistent with the module.
    batch = 256
    input_dim = 32
    hidden_layers = [64, 32]
    problem_type = "classification"
    num_classes = 1  # => sigmoid output, 1 neuron

    key = jax.random.PRNGKey(0)
    key, xk = jax.random.split(key)
    x = jax.random.normal(xk, (batch, input_dim), jnp.float32)

    params = init_params(key, input_dim, hidden_layers, problem_type, num_classes)
    # One-time weight/bias cast + lane padding (outside the per-call path).
    kparams = prepare_kernel_params(params)

    out_dim = params[-1][0].shape[1]
    apply_sigmoid = problem_type == "classification" and num_classes == 1

    fwd = jax.jit(functools.partial(
        neural_network_forward,
        out_dim=out_dim,
        apply_sigmoid=apply_sigmoid,
    ))
    out = jax.block_until_ready(fwd(x, kparams))

    ref = reference_forward(
        x, params, problem_type=problem_type, num_classes=num_classes
    )
    assert out.shape == (batch, out_dim), out.shape
    # bf16 MXU operands + approx reciprocal head => loosened tolerance vs f32 ref.
    assert jnp.allclose(out, ref, atol=2e-2, rtol=2e-2), (
        "mismatch vs reference: max abs diff "
        f"{float(jnp.max(jnp.abs(out - ref)))}"
    )

    print("KERNEL_OK")
</pallas_src>

<mosaic_0001>
module attributes {stable_mosaic.version = 11 : i64} {
  func.func @kernel(%arg0: i32, %arg1: memref<256x32xf32, #tpu.memory_space<vmem>>, %arg2: memref<32x128xbf16, #tpu.memory_space<vmem>>, %arg3: memref<1x128xf32, #tpu.memory_space<vmem>>, %arg4: memref<128x128xbf16, #tpu.memory_space<vmem>>, %arg5: memref<1x128xf32, #tpu.memory_space<vmem>>, %arg6: memref<128x128xbf16, #tpu.memory_space<vmem>>, %arg7: memref<1x128xf32, #tpu.memory_space<vmem>>, %arg8: memref<256x128xf32, #tpu.memory_space<vmem>>) attributes {dimension_semantics = [#tpu.dimension_semantics<parallel>], iteration_bounds = array<i64: 1>, scalar_prefetch = 0 : i64, scratch_operands = 0 : i64, tpu.core_type = #tpu.core_type<tc>, window_params = [{transform_indices = @transform_0, window_bounds = array<i64: 256, 32>}, {pipeline_mode = #tpu.pipeline_mode<synchronous>, transform_indices = @transform_1, window_bounds = array<i64: 32, 128>}, {pipeline_mode = #tpu.pipeline_mode<synchronous>, transform_indices = @transform_2, window_bounds = array<i64: 1, 128>}, {pipeline_mode = #tpu.pipeline_mode<synchronous>, transform_indices = @transform_3, window_bounds = array<i64: 128, 128>}, {pipeline_mode = #tpu.pipeline_mode<synchronous>, transform_indices = @transform_4, window_bounds = array<i64: 1, 128>}, {pipeline_mode = #tpu.pipeline_mode<synchronous>, transform_indices = @transform_5, window_bounds = array<i64: 128, 128>}, {pipeline_mode = #tpu.pipeline_mode<synchronous>, transform_indices = @transform_6, window_bounds = array<i64: 1, 128>}, {transform_indices = @transform_7, window_bounds = array<i64: 256, 128>}]} {
    %c0 = arith.constant 0 : index
    %c0_0 = arith.constant 0 : index
    %0 = vector.load %arg1[%c0, %c0_0] : memref<256x32xf32, #tpu.memory_space<vmem>>, vector<256x32xf32>
    %1 = arith.truncf %0 : vector<256x32xf32> to vector<256x32xbf16>
    %c0_1 = arith.constant 0 : index
    %c0_2 = arith.constant 0 : index
    %2 = vector.load %arg2[%c0_1, %c0_2] : memref<32x128xbf16, #tpu.memory_space<vmem>>, vector<32x128xbf16>
    %c0_3 = arith.constant 0 : index
    %c0_4 = arith.constant 0 : index
    %3 = vector.load %arg3[%c0_3, %c0_4] : memref<1x128xf32, #tpu.memory_space<vmem>>, vector<1x128xf32>
    %cst = arith.constant dense<0.000000e+00> : vector<256x128xf32>
    %4 = tpu.matmul %1, %2, %cst {dimension_numbers = #tpu.dot_dimension_numbers<[1], [0], [0], [1], [0, 0, 1, 1], [], []>} : vector<256x32xbf16>, vector<32x128xbf16>, vector<256x128xf32> -> vector<256x128xf32>
    %5 = vector.broadcast %3 : vector<1x128xf32> to vector<256x128xf32>
    %6 = arith.addf %4, %5 : vector<256x128xf32>
    %cst_5 = arith.constant 0.000000e+00 : f32
    %7 = vector.broadcast %cst_5 : f32 to vector<256x128xf32>
    %8 = arith.maximumf %6, %7 : vector<256x128xf32>
    %9 = arith.truncf %8 : vector<256x128xf32> to vector<256x128xbf16>
    %c0_6 = arith.constant 0 : index
    %c0_7 = arith.constant 0 : index
    %10 = vector.load %arg4[%c0_6, %c0_7] : memref<128x128xbf16, #tpu.memory_space<vmem>>, vector<128x128xbf16>
    %c0_8 = arith.constant 0 : index
    %c0_9 = arith.constant 0 : index
    %11 = vector.load %arg5[%c0_8, %c0_9] : memref<1x128xf32, #tpu.memory_space<vmem>>, vector<1x128xf32>
    %cst_10 = arith.constant dense<0.000000e+00> : vector<256x128xf32>
    %12 = tpu.matmul %9, %10, %cst_10 {dimension_numbers = #tpu.dot_dimension_numbers<[1], [0], [0], [1], [0, 0, 1, 1], [], []>} : vector<256x128xbf16>, vector<128x128xbf16>, vector<256x128xf32> -> vector<256x128xf32>
    %13 = vector.broadcast %11 : vector<1x128xf32> to vector<256x128xf32>
    %14 = arith.addf %12, %13 : vector<256x128xf32>
    %cst_11 = arith.constant 0.000000e+00 : f32
    %15 = vector.broadcast %cst_11 : f32 to vector<256x128xf32>
    %16 = arith.maximumf %14, %15 : vector<256x128xf32>
    %17 = arith.truncf %16 : vector<256x128xf32> to vector<256x128xbf16>
    %c0_12 = arith.constant 0 : index
    %c0_13 = arith.constant 0 : index
    %18 = vector.load %arg6[%c0_12, %c0_13] : memref<128x128xbf16, #tpu.memory_space<vmem>>, vector<128x128xbf16>
    %c0_14 = arith.constant 0 : index
    %c0_15 = arith.constant 0 : index
    %19 = vector.load %arg7[%c0_14, %c0_15] : memref<1x128xf32, #tpu.memory_space<vmem>>, vector<1x128xf32>
    %cst_16 = arith.constant dense<0.000000e+00> : vector<256x128xf32>
    %20 = tpu.matmul %17, %18, %cst_16 {dimension_numbers = #tpu.dot_dimension_numbers<[1], [0], [0], [1], [0, 0, 1, 1], [], []>} : vector<256x128xbf16>, vector<128x128xbf16>, vector<256x128xf32> -> vector<256x128xf32>
    %21 = vector.broadcast %19 : vector<1x128xf32> to vector<256x128xf32>
    %22 = arith.addf %20, %21 : vector<256x128xf32>
    %23 = math.absf %22 : vector<256x128xf32>
    %cst_17 = arith.constant 0.000000e+00 : f32
    %24 = vector.broadcast %cst_17 : f32 to vector<256x128xf32>
    %25 = arith.subf %24, %23 : vector<256x128xf32>
    %26 = math.exp %25 : vector<256x128xf32>
    %cst_18 = arith.constant 1.000000e+00 : f32
    %27 = vector.broadcast %cst_18 : f32 to vector<256x128xf32>
    %28 = arith.addf %27, %26 : vector<256x128xf32>
    %29 = tpu.reciprocal %28 {approx = true} : vector<256x128xf32> -> vector<256x128xf32>
    %cst_19 = arith.constant 0.000000e+00 : f32
    %30 = vector.broadcast %cst_19 : f32 to vector<256x128xf32>
    %31 = arith.cmpf oge, %22, %30 : vector<256x128xf32>
    %32 = arith.mulf %26, %29 : vector<256x128xf32>
    %33 = arith.select %31, %29, %32 : vector<256x128xi1>, vector<256x128xf32>
    %c0_20 = arith.constant 0 : index
    %c0_21 = arith.constant 0 : index
    %34 = vector.load %arg8[%c0_20, %c0_21] : memref<256x128xf32, #tpu.memory_space<vmem>>, vector<256x128xf32>
    tpu.vector_store %arg8[%c0_20, %c0_21], %33 {strides = array<i32>} : memref<256x128xf32, #tpu.memory_space<vmem>>, vector<256x128xf32>,
    return
  }
  func.func @transform_0(%arg0: i32) -> (i32, i32) {
    %c0_i32 = arith.constant 0 : i32
    %c0_i32_0 = arith.constant 0 : i32
    return %arg0, %c0_i32 : i32, i32
  }
  func.func @transform_1(%arg0: i32) -> (i32, i32) {
    %c0_i32 = arith.constant 0 : i32
    %c0_i32_0 = arith.constant 0 : i32
    %c0_i32_1 = arith.constant 0 : i32
    return %c0_i32, %c0_i32_0 : i32, i32
  }
  func.func @transform_2(%arg0: i32) -> (i32, i32) {
    %c0_i32 = arith.constant 0 : i32
    %c0_i32_0 = arith.constant 0 : i32
    %c0_i32_1 = arith.constant 0 : i32
    return %c0_i32, %c0_i32_0 : i32, i32
  }
  func.func @transform_3(%arg0: i32) -> (i32, i32) {
    %c0_i32 = arith.constant 0 : i32
    %c0_i32_0 = arith.constant 0 : i32
    %c0_i32_1 = arith.constant 0 : i32
    return %c0_i32, %c0_i32_0 : i32, i32
  }
  func.func @transform_4(%arg0: i32) -> (i32, i32) {
    %c0_i32 = arith.constant 0 : i32
    %c0_i32_0 = arith.constant 0 : i32
    %c0_i32_1 = arith.constant 0 : i32
    return %c0_i32, %c0_i32_0 : i32, i32
  }
  func.func @transform_5(%arg0: i32) -> (i32, i32) {
    %c0_i32 = arith.constant 0 : i32
    %c0_i32_0 = arith.constant 0 : i32
    %c0_i32_1 = arith.constant 0 : i32
    return %c0_i32, %c0_i32_0 : i32, i32
  }
  func.func @transform_6(%arg0: i32) -> (i32, i32) {
    %c0_i32 = arith.constant 0 : i32
    %c0_i32_0 = arith.constant 0 : i32
    %c0_i32_1 = arith.constant 0 : i32
    return %c0_i32, %c0_i32_0 : i32, i32
  }
  func.func @transform_7(%arg0: i32) -> (i32, i32) {
    %c0_i32 = arith.constant 0 : i32
    %c0_i32_0 = arith.constant 0 : i32
    return %arg0, %c0_i32 : i32, i32
  }
}

</mosaic_0001>

<bundles_post_ra>
// kernel: neural_network_forward.1
= control target key start
LH: loop header
LB: loop body
LE: loop exit
PB: predicated region body
PF: predicated region fallthrough
CT: control target
= control target key end

     0   :  { %vm98_vm0 = vcmask 261120   ;;  %s2253_s1 = inlined_call_operand.vmem [shape: bf16[32,128], index: 1, kind: input, shape index: {}]   ;;  %s2254_s0 = inlined_call_operand.vmem [shape: f32[256,32], index: 0, kind: input, shape index: {}]   ;;  %s2255_s3 = inlined_call_operand.vmem [shape: bf16[128,128], index: 3, kind: input, shape index: {}]   ;;  %s2256_s5 = inlined_call_operand.vmem [shape: bf16[128,128], index: 5, kind: input, shape index: {}]   ;;  %s2257_s2 = inlined_call_operand.vmem [shape: f32[1,128], index: 2, kind: input, shape index: {}]   ;;  %s2258_s4 = inlined_call_operand.vmem [shape: f32[1,128], index: 4, kind: input, shape index: {}]   ;;  %s2259_s6 = inlined_call_operand.vmem [shape: f32[1,128], index: 6, kind: input, shape index: {}]   ;;  %s2260_s7 = inlined_call_operand.vmem [shape: f32[256,128], index: 7, kind: output, shape index: {}]  }
   0x1   :  { %v1431_v0 = vld [vmem:[%s2253_s1] sm:$0xff]   ;;  %v1432_v1 = vld [vmem:[%s2253_s1 + $0x8] sm:$0xff]   ;;  %v29_v5 = vld [vmem:[%s2254_s0 + $0x10] sm:$0xff] }
   0x2   :  { %1295 = vmatprep.subr.bf16.mxu0 %v1431_v0  ;;  %v27_v2 = vld [vmem:[%s2254_s0] sm:$0xff]  ;;  %v28_v3 = vld [vmem:[%s2254_s0 + $0x8] sm:$0xff]  ;;  %1427 = vmatprep.subr.bf16.mxu1 %v1431_v0  ;;  %v30_v6 = vld [vmem:[%s2254_s0 + $0x18] sm:$0xff] }
   0x3   :  { %1296 = vmatpush3.bf16.msra.mxu0 %v1431_v0  ;;  %v59_v4 = vpack.c.bf16 %v28_v3, %v27_v2  ;;  %1429 = vmatpush3.bf16.msra.mxu1 %v1431_v0  ;;  %v31_v7 = vld [vmem:[%s2254_s0 + $0x20] sm:$0xff]  ;;  %v32_v8 = vld [vmem:[%s2254_s0 + $0x28] sm:$0xff]  ;;  %v60_v9 = vpack.c.bf16 %v30_v6, %v29_v5  ;;  %v45_v14 = vld [vmem:[%s2254_s0 + $0x90] sm:$0xff] }
   0x4   :  { %1297 = vmatprep.subr.bf16.mxu0 %v1432_v1  ;;  %1428 = vmatprep.subr.bf16.mxu1 %v1432_v1  ;;  %v61_v10 = vpack.c.bf16 %v32_v8, %v31_v7  ;;  %v43_v11 = vld [vmem:[%s2254_s0 + $0x80] sm:$0xff]  ;;  %v44_v12 = vld [vmem:[%s2254_s0 + $0x88] sm:$0xff]  ;;  %v46_v15 = vld [vmem:[%s2254_s0 + $0x98] sm:$0xff] }
   0x5   :  { %1299 = vmatprep.mubr.msk.bf16.mxu0 %vm98_vm0, %v59_v4  ;;  %v67_v13 = vpack.c.bf16 %v44_v12, %v43_v11  ;;  %v47_v16 = vld [vmem:[%s2254_s0 + $0xa0] sm:$0xff]  ;;  %v68_v17 = vpack.c.bf16 %v46_v15, %v45_v14  ;;  %v48_v18 = vld [vmem:[%s2254_s0 + $0xa8] sm:$0xff]  ;;  %v33_v19 = vld [vmem:[%s2254_s0 + $0x30] sm:$0xff] }
   0x6   :  { %v34_v20 = vld [vmem:[%s2254_s0 + $0x38] sm:$0xff]  ;;  %v35_v21 = vld [vmem:[%s2254_s0 + $0x40] sm:$0xff]  ;;  %v69_v22 = vpack.c.bf16 %v48_v18, %v47_v16  ;;  %v36_v23 = vld [vmem:[%s2254_s0 + $0x48] sm:$0xff] }
   0x7   :  { %1298 = vmatpush3.bf16.msra.mxu0 %v1432_v1  ;;  %1430 = vmatpush3.bf16.msra.mxu1 %v1432_v1  ;;  %v49_v24 = vld [vmem:[%s2254_s0 + $0xb0] sm:$0xff]  ;;  %v50_v25 = vld [vmem:[%s2254_s0 + $0xb8] sm:$0xff]  ;;  %v51_v26 = vld [vmem:[%s2254_s0 + $0xc0] sm:$0xff]  ;;  %v62_v29 = vpack.c.bf16 %v34_v20, %v33_v19  ;;  %v63_v31 = vpack.c.bf16 %v36_v23, %v35_v21 }
   0x8   :  { %1315 = vmatprep.mubr.msk.bf16.mxu1 %vm98_vm0, %v67_v13  ;;  %v52_v27 = vld [vmem:[%s2254_s0 + $0xc8] sm:$0xff]  ;;  %v1433_v28 = vld [vmem:[%s2255_s3] sm:$0xff]   ;;  %v70_v32 = vpack.c.bf16 %v50_v25, %v49_v24  ;;  %v37_v34 = vld [vmem:[%s2254_s0 + $0x50] sm:$0xff] }
   0x9   :  { %v1434_v30 = vld [vmem:[%s2255_s3 + $0x8] sm:$0xff]   ;;  %1331 = vmatprep.subr.bf16.mxu1 %v1433_v28  ;;  %v71_v33 = vpack.c.bf16 %v52_v27, %v51_v26  ;;  %v38_v35 = vld [vmem:[%s2254_s0 + $0x58] sm:$0xff]  ;;  %v1435_v36 = vld [vmem:[%s2255_s3 + $0x10] sm:$0xff]  }
   0xa   :  { %1300 = vmatmul.mubr.msk.bf16.vlgmr.msra.gmra.mrb[0].mxu0 %vm98_vm0, %v60_v9  ;;  %1316 = vmatmul.mubr.msk.bf16.vlgmr.msra.gmra.mrb[0].mxu1 %vm98_vm0, %v68_v17  ;;  %v39_v37 = vld [vmem:[%s2254_s0 + $0x60] sm:$0xff]  ;;  %v40_v38 = vld [vmem:[%s2254_s0 + $0x68] sm:$0xff]  ;;  %v53_v39 = vld [vmem:[%s2254_s0 + $0xd0] sm:$0xff]  ;;  %v64_v44 = vpack.c.bf16 %v38_v35, %v37_v34 }
   0xb   :  { %1303 = vmatprep.mubr.msk.bf16.mxu0 %vm98_vm0, %v61_v10  ;;  %1319 = vmatprep.mubr.msk.bf16.mxu1 %vm98_vm0, %v69_v22  ;;  %v54_v40 = vld [vmem:[%s2254_s0 + $0xd8] sm:$0xff]  ;;  %v55_v41 = vld [vmem:[%s2254_s0 + $0xe0] sm:$0xff]  ;;  %v56_v42 = vld [vmem:[%s2254_s0 + $0xe8] sm:$0xff]  ;;  %v65_v45 = vpack.c.bf16 %v40_v38, %v39_v37 }
   0xc   :  { %1332 = vmatpush3.bf16.msra.mxu1 %v1433_v28  ;;  %v1436_v43 = vld [vmem:[%s2255_s3 + $0x18] sm:$0xff]   ;;  %v72_v46 = vpack.c.bf16 %v54_v40, %v53_v39  ;;  %v73_v47 = vpack.c.bf16 %v56_v42, %v55_v41  ;;  %v1437_v48 = vld [vmem:[%s2255_s3 + $0x20] sm:$0xff]   ;;  %v41_v49 = vld [vmem:[%s2254_s0 + $0x70] sm:$0xff] }
   0xd   :  { %1333 = vmatprep.subr.bf16.mxu1 %v1434_v30  ;;  %v42_v50 = vld [vmem:[%s2254_s0 + $0x78] sm:$0xff]  ;;  %v57_v51 = vld [vmem:[%s2254_s0 + $0xf0] sm:$0xff]  ;;  %v1438_v53 = vld [vmem:[%s2255_s3 + $0x28] sm:$0xff]  }
   0xe   :  { %v58_v52 = vld [vmem:[%s2254_s0 + $0xf8] sm:$0xff]  ;;  %v66_v54 = vpack.c.bf16 %v42_v50, %v41_v49  ;;  %v1439_v56 = vld [vmem:[%s2255_s3 + $0x30] sm:$0xff]   ;;  %v1441_v58 = vld [vmem:[%s2256_s5] sm:$0xff]  }
   0xf   :  { %v74_v55 = vpack.c.bf16 %v58_v52, %v57_v51  ;;  %v1440_v57 = vld [vmem:[%s2255_s3 + $0x38] sm:$0xff]   ;;  %v1442_v59 = vld [vmem:[%s2256_s5 + $0x8] sm:$0xff]   ;;  %1379 = vmatprep.subr.bf16.mxu0 %v1441_v58  ;;  %v1443_v60 = vld [vmem:[%s2256_s5 + $0x10] sm:$0xff]  }
  0x10   :  { %1334 = vmatpush3.bf16.msra.mxu1 %v1434_v30  ;;  %1380 = vmatpush3.bf16.msra.mxu0 %v1441_v58  ;;  %v1444_v61 = vld [vmem:[%s2256_s5 + $0x18] sm:$0xff]   ;;  %v1445_v62 = vld [vmem:[%s2256_s5 + $0x20] sm:$0xff]   ;;  %v1446_v63 = vld [vmem:[%s2256_s5 + $0x28] sm:$0xff]  }
  0x11   :  { %1335 = vmatprep.subr.bf16.mxu1 %v1435_v36  ;;  %1381 = vmatprep.subr.bf16.mxu0 %v1442_v59  ;;  %v1780_v0 = vld [vmem:[%s2257_s2] ss:$0 sm:$0xff] }
  0x12   :  { %1304 = vmatmul.mubr.msk.bf16.gmra.mrb[4].mxu0 %vm98_vm0, %v62_v29  ;;  %1320 = vmatmul.mubr.msk.bf16.gmra.mrb[4].mxu1 %vm98_vm0, %v70_v32 }
  0x13   :  { %1307 = vmatprep.mubr.msk.bf16.mxu0 %vm98_vm0, %v63_v31  ;;  %1323 = vmatprep.mubr.msk.bf16.mxu1 %vm98_vm0, %v71_v33 }
  0x14   :  { %1336 = vmatpush3.bf16.msra.mxu1 %v1435_v36  ;;  %1382 = vmatpush3.bf16.msra.mxu0 %v1442_v59 }
  0x15   :  { %1337 = vmatprep.subr.bf16.mxu1 %v1436_v43  ;;  %1383 = vmatprep.subr.bf16.mxu0 %v1443_v60 }
  0x18   :  { %1338 = vmatpush3.bf16.msra.mxu1 %v1436_v43  ;;  %1384 = vmatpush3.bf16.msra.mxu0 %v1443_v60 }
  0x19   :  { %1339 = vmatprep.subr.bf16.mxu1 %v1437_v48  ;;  %1385 = vmatprep.subr.bf16.mxu0 %v1444_v61 }
  0x1a   :  { %1308 = vmatmul.mubr.msk.bf16.gmra.mrb[8].mxu0 %vm98_vm0, %v64_v44  ;;  %1324 = vmatmul.mubr.msk.bf16.gmra.mrb[8].mxu1 %vm98_vm0, %v72_v46 }
  0x1b   :  { %1311 = vmatprep.mubr.msk.bf16.mxu0 %vm98_vm0, %v65_v45  ;;  %1327 = vmatprep.mubr.msk.bf16.mxu1 %vm98_vm0, %v73_v47 }
  0x1c   :  { %1340 = vmatpush3.bf16.msra.mxu1 %v1437_v48  ;;  %1386 = vmatpush3.bf16.msra.mxu0 %v1444_v61 }
  0x1d   :  { %1341 = vmatprep.subr.bf16.mxu1 %v1438_v53  ;;  %1387 = vmatprep.subr.bf16.mxu0 %v1445_v62 }
  0x20   :  { %1342 = vmatpush3.bf16.msra.mxu1 %v1438_v53  ;;  %1388 = vmatpush3.bf16.msra.mxu0 %v1445_v62 }
  0x21   :  { %1343 = vmatprep.subr.bf16.mxu1 %v1439_v56  ;;  %1389 = vmatprep.subr.bf16.mxu0 %v1446_v63 }
  0x22   :  { %1312 = vmatmul.mubr.msk.bf16.gmra.mrb[12].mxu0 %vm98_vm0, %v66_v54  ;;  %1328 = vmatmul.mubr.msk.bf16.gmra.mrb[12].mxu1 %vm98_vm0, %v74_v55 }
  0x24   :  { %1344 = vmatpush3.bf16.msra.mxu1 %v1439_v56  ;;  %1390 = vmatpush3.bf16.msra.mxu0 %v1446_v63 }
  0x25   :  { %1345 = vmatprep.subr.bf16.mxu1 %v1440_v57 }
  0x28   :  { %1346 = vmatpush3.bf16.msra.mxu1 %v1440_v57 }
  0xdd   :  { %v1301_v1 = vpop.f32.mrb[0].mxu0  ;;  %v1317_v4 = vpop.f32.mrb[0].mxu1 }
  0xde   :  { %v190_v2 = vadd.f32 %v1301_v1, %v1780_v0  ;;  %v181_v3 = vpop.f32.mrb[1].mxu0  ;;  %v254_v7 = vadd.f32 %v1317_v4, %v1780_v0  ;;  %v245_v8 = vpop.f32.mrb[1].mxu1 }
  0xdf   :  { %v182_v5 = vadd.f32 %v1780_v0, %v181_v3  ;;  %v1302_v6 = vpop.f32.mrb[2].mxu0  ;;  %v246_v11 = vadd.f32 %v1780_v0, %v245_v8  ;;  %v1318_v12 = vpop.f32.mrb[2].mxu1 }
  0xe0   :  { %v193_v9 = vadd.f32 %v1302_v6, %v1780_v0  ;;  %v184_v10 = vpop.f32.mrb[3].mxu0  ;;  %v326_v14 = vmax.f32 %v254_v7, 0.0  ;;  %v257_v15 = vadd.f32 %v1318_v12, %v1780_v0  ;;  %v248_v16 = vpop.f32.mrb[3].mxu1  ;;  %v310_v17 = vmax.f32 %v190_v2, 0.0 }
  0xe1   :  { %v185_v13 = vadd.f32 %v1780_v0, %v184_v10  ;;  %v324_v19 = vmax.f32 %v246_v11, 0.0  ;;  %v249_v20 = vadd.f32 %v1780_v0, %v248_v16  ;;  %v308_v21 = vmax.f32 %v182_v5, 0.0 }
  0xe2   :  { %v311_v18 = vmax.f32 %v193_v9, 0.0  ;;  %v327_v23 = vmax.f32 %v257_v15, 0.0 }
  0xe3   :  { %v309_v22 = vmax.f32 %v185_v13, 0.0  ;;  %v325_v25 = vmax.f32 %v249_v20, 0.0 }
  0xe4   :  { %v341_v24 = vpack.c.bf16 %v311_v18, %v310_v17  ;;  %v1790_v28 = vpack.c.bf16 %v327_v23, %v326_v14 }
  0xe5   :  { %v340_v26 = vpack.c.bf16 %v309_v22, %v308_v21  ;;  %v1305_v27 = vpop.f32.mrb[4].mxu0  ;;  %v1793_v31 = vpack.c.bf16 %v325_v25, %v324_v19  ;;  %v1321_v32 = vpop.f32.mrb[4].mxu1 }
  0xe6   :  { %v206_v29 = vadd.f32 %v1305_v27, %v1780_v0  ;;  %v197_v30 = vpop.f32.mrb[5].mxu0  ;;  %v270_v35 = vadd.f32 %v1321_v32, %v1780_v0  ;;  %v261_v36 = vpop.f32.mrb[5].mxu1 }
  0xe7   :  { %v198_v33 = vadd.f32 %v1780_v0, %v197_v30  ;;  %v1306_v34 = vpop.f32.mrb[6].mxu0  ;;  %1347 = vmatprep.mubr.bf16.mxu1 %v340_v26  ;;  %v262_v39 = vadd.f32 %v1780_v0, %v261_v36  ;;  %v1322_v40 = vpop.f32.mrb[6].mxu1 }
  0xe8   :  { %v209_v37 = vadd.f32 %v1306_v34, %v1780_v0  ;;  %v200_v38 = vpop.f32.mrb[7].mxu0  ;;  %1348 = vmatmul.mubr.bf16.vlgmr.msra.gmra.mrb[16].mxu1 %v341_v24  ;;  %v330_v42 = vmax.f32 %v270_v35, 0.0  ;;  %v273_v43 = vadd.f32 %v1322_v40, %v1780_v0  ;;  %v264_v44 = vpop.f32.mrb[7].mxu1  ;;  %v314_v45 = vmax.f32 %v206_v29, 0.0 }
  0xe9   :  { %v201_v41 = vadd.f32 %v1780_v0, %v200_v38  ;;  %v328_v47 = vmax.f32 %v262_v39, 0.0  ;;  %v265_v48 = vadd.f32 %v1780_v0, %v264_v44  ;;  %v312_v49 = vmax.f32 %v198_v33, 0.0 }
  0xea   :  { %v315_v46 = vmax.f32 %v209_v37, 0.0  ;;  %v331_v51 = vmax.f32 %v273_v43, 0.0 }
  0xeb   :  { %v313_v50 = vmax.f32 %v201_v41, 0.0  ;;  %v329_v53 = vmax.f32 %v265_v48, 0.0 }
  0xec   :  { %v343_v52 = vpack.c.bf16 %v315_v46, %v314_v45  ;;  %v1802_v56 = vpack.c.bf16 %v331_v51, %v330_v42 }
  0xed   :  { %v342_v54 = vpack.c.bf16 %v313_v50, %v312_v49  ;;  %v1309_v55 = vpop.f32.mrb[8].mxu0  ;;  %v350_v59 = vpack.c.bf16 %v329_v53, %v328_v47  ;;  %v1325_v60 = vpop.f32.mrb[8].mxu1 }
  0xee   :  { %v222_v57 = vadd.f32 %v1309_v55, %v1780_v0  ;;  %v213_v58 = vpop.f32.mrb[9].mxu0  ;;  %v286_v63 = vadd.f32 %v1325_v60, %v1780_v0  ;;  %v277_v1 = vpop.f32.mrb[9].mxu1 }
  0xef   :  { %v214_v61 = vadd.f32 %v1780_v0, %v213_v58  ;;  %v1310_v62 = vpop.f32.mrb[10].mxu0  ;;  %1351 = vmatprep.mubr.bf16.mxu1 %v342_v54  ;;  %v278_v4 = vadd.f32 %v1780_v0, %v277_v1  ;;  %v1326_v5 = vpop.f32.mrb[10].mxu1 }
  0xf0   :  { %v225_v2 = vadd.f32 %v1310_v62, %v1780_v0  ;;  %v216_v3 = vpop.f32.mrb[11].mxu0  ;;  %1352 = vmatmul.mubr.bf16.gmra.mrb[20].mxu1 %v343_v52  ;;  %v334_v7 = vmax.f32 %v286_v63, 0.0  ;;  %v289_v8 = vadd.f32 %v1326_v5, %v1780_v0  ;;  %v280_v9 = vpop.f32.mrb[11].mxu1  ;;  %v318_v10 = vmax.f32 %v222_v57, 0.0  ;;  %v1448_v52 = vld [vmem:[%s2256_s5 + $0x38] sm:$0xff]  }
  0xf1   :  { %v217_v6 = vadd.f32 %v1780_v0, %v216_v3  ;;  %v332_v12 = vmax.f32 %v278_v4, 0.0  ;;  %v281_v13 = vadd.f32 %v1780_v0, %v280_v9  ;;  %v316_v14 = vmax.f32 %v214_v61, 0.0 }
  0xf2   :  { %v319_v11 = vmax.f32 %v225_v2, 0.0  ;;  %v335_v16 = vmax.f32 %v289_v8, 0.0 }
  0xf3   :  { %v317_v15 = vmax.f32 %v217_v6, 0.0  ;;  %v333_v18 = vmax.f32 %v281_v13, 0.0 }
  0xf4   :  { %v345_v17 = vpack.c.bf16 %v319_v11, %v318_v10  ;;  %v353_v21 = vpack.c.bf16 %v335_v16, %v334_v7 }
  0xf5   :  { %v344_v19 = vpack.c.bf16 %v317_v15, %v316_v14  ;;  %v1313_v20 = vpop.f32.mrb[12].mxu0  ;;  %v352_v24 = vpack.c.bf16 %v333_v18, %v332_v12  ;;  %v1329_v25 = vpop.f32.mrb[12].mxu1 }
  0xf6   :  { %v238_v22 = vadd.f32 %v1313_v20, %v1780_v0  ;;  %v229_v23 = vpop.f32.mrb[13].mxu0  ;;  %v302_v29 = vadd.f32 %v1329_v25, %v1780_v0  ;;  %v293_v30 = vpop.f32.mrb[13].mxu1 }
  0xf7   :  { %v230_v26 = vadd.f32 %v1780_v0, %v229_v23  ;;  %v1314_v27 = vpop.f32.mrb[14].mxu0  ;;  %1355 = vmatprep.mubr.bf16.mxu1 %v344_v19  ;;  %v294_v34 = vadd.f32 %v1780_v0, %v293_v30  ;;  %v1330_v35 = vpop.f32.mrb[14].mxu1 }
  0xf8   :  { %v241_v32 = vadd.f32 %v1314_v27, %v1780_v0  ;;  %v232_v33 = vpop.f32.mrb[15].mxu0  ;;  %1356 = vmatmul.mubr.bf16.gmra.mrb[24].mxu1 %v345_v17  ;;  %v338_v37 = vmax.f32 %v302_v29, 0.0  ;;  %v305_v38 = vadd.f32 %v1330_v35, %v1780_v0  ;;  %v296_v39 = vpop.f32.mrb[15].mxu1  ;;  %v322_v40 = vmax.f32 %v238_v22, 0.0 }
  0xf9   :  { %v233_v36 = vadd.f32 %v1780_v0, %v232_v33  ;;  %v336_v42 = vmax.f32 %v294_v34, 0.0  ;;  %v297_v43 = vadd.f32 %v1780_v0, %v296_v39  ;;  %v320_v44 = vmax.f32 %v230_v26, 0.0  ;;  %v1447_v0 = vld [vmem:[%s2256_s5 + $0x30] sm:$0xff]  }
  0xfa   :  { %v323_v41 = vmax.f32 %v241_v32, 0.0  ;;  %v339_v46 = vmax.f32 %v305_v38, 0.0  ;;  %1391 = vmatprep.subr.bf16.mxu0 %v1447_v0 }
  0xfb   :  { %v321_v45 = vmax.f32 %v233_v36, 0.0  ;;  %v337_v48 = vmax.f32 %v297_v43, 0.0  ;;  %1392 = vmatpush3.bf16.msra.mxu0 %v1447_v0 }
  0xfc   :  { %v347_v47 = vpack.c.bf16 %v323_v41, %v322_v40  ;;  %v355_v50 = vpack.c.bf16 %v339_v46, %v338_v37  ;;  %1393 = vmatprep.subr.bf16.mxu0 %v1448_v52 }
  0xfd   :  { %v346_v49 = vpack.c.bf16 %v321_v45, %v320_v44  ;;  %v354_v51 = vpack.c.bf16 %v337_v48, %v336_v42 }
  0xff   :  { %1359 = vmatprep.mubr.bf16.mxu1 %v346_v49  ;;  %1394 = vmatpush3.bf16.msra.mxu0 %v1448_v52 }
 0x100   :  { %1360 = vmatmul.mubr.bf16.gmra.mrb[28].mxu1 %v347_v47 }
 0x101   :  { %1363 = vmatprep.mubr.bf16.mxu1 %v1793_v31 }
 0x108   :  { %1364 = vmatmul.mubr.bf16.gmra.mrb[32].mxu1 %v1790_v28  ;;  %v1832_v28 = vld [vmem:[%s2258_s4] ss:$0 sm:$0xff] }
 0x109   :  { %1367 = vmatprep.mubr.bf16.mxu1 %v350_v59 }
 0x110   :  { %1368 = vmatmul.mubr.bf16.gmra.mrb[36].mxu1 %v1802_v56 }
 0x111   :  { %1371 = vmatprep.mubr.bf16.mxu1 %v352_v24 }
 0x118   :  { %1372 = vmatmul.mubr.bf16.gmra.mrb[40].mxu1 %v353_v21 }
 0x119   :  { %1375 = vmatprep.mubr.bf16.mxu1 %v354_v51 }
 0x120   :  { %1376 = vmatmul.mubr.bf16.gmra.mrb[44].mxu1 %v355_v50 }
 0x1bb   :  { %v1349_v31 = vpop.f32.mrb[16].mxu1 }
 0x1bc   :  { %v470_v53 = vadd.f32 %v1349_v31, %v1832_v28  ;;  %v461_v54 = vpop.f32.mrb[17].mxu1 }
 0x1bd   :  { %v462_v55 = vadd.f32 %v1832_v28, %v461_v54  ;;  %v1350_v56 = vpop.f32.mrb[18].mxu1 }
 0x1be   :  { %v473_v57 = vadd.f32 %v1350_v56, %v1832_v28  ;;  %v464_v58 = vpop.f32.mrb[19].mxu1  ;;  %v590_v60 = vmax.f32 %v470_v53, 0.0 }
 0x1bf   :  { %v465_v59 = vadd.f32 %v1832_v28, %v464_v58  ;;  %v588_v62 = vmax.f32 %v462_v55, 0.0 }
 0x1c0   :  { %v591_v61 = vmax.f32 %v473_v57, 0.0 }
 0x1c1   :  { %v589_v63 = vmax.f32 %v465_v59, 0.0 }
 0x1c2   :  { %v621_v1 = vpack.c.bf16 %v591_v61, %v590_v60 }
 0x1c3   :  { %v620_v2 = vpack.c.bf16 %v589_v63, %v588_v62  ;;  %v1353_v3 = vpop.f32.mrb[20].mxu1 }
 0x1c4   :  { %v486_v4 = vadd.f32 %v1353_v3, %v1832_v28  ;;  %v477_v5 = vpop.f32.mrb[21].mxu1 }
 0x1c5   :  { %v478_v6 = vadd.f32 %v1832_v28, %v477_v5  ;;  %v1354_v7 = vpop.f32.mrb[22].mxu1  ;;  %1395 = vmatprep.mubr.bf16.mxu0 %v620_v2 }
 0x1c6   :  { %v489_v8 = vadd.f32 %v1354_v7, %v1832_v28  ;;  %v480_v9 = vpop.f32.mrb[23].mxu1  ;;  %1396 = vmatmul.mubr.bf16.vlgmr.msra.gmra.mrb[16].mxu0 %v621_v1  ;;  %v594_v11 = vmax.f32 %v486_v4, 0.0 }
 0x1c7   :  { %v481_v10 = vadd.f32 %v1832_v28, %v480_v9  ;;  %v592_v13 = vmax.f32 %v478_v6, 0.0 }
 0x1c8   :  { %v595_v12 = vmax.f32 %v489_v8, 0.0 }
 0x1c9   :  { %v593_v14 = vmax.f32 %v481_v10, 0.0 }
 0x1ca   :  { %v623_v15 = vpack.c.bf16 %v595_v12, %v594_v11 }
 0x1cb   :  { %v622_v16 = vpack.c.bf16 %v593_v14, %v592_v13  ;;  %v1357_v17 = vpop.f32.mrb[24].mxu1 }
 0x1cc   :  { %v502_v18 = vadd.f32 %v1357_v17, %v1832_v28  ;;  %v493_v19 = vpop.f32.mrb[25].mxu1 }
 0x1cd   :  { %v494_v20 = vadd.f32 %v1832_v28, %v493_v19  ;;  %v1358_v21 = vpop.f32.mrb[26].mxu1  ;;  %1399 = vmatprep.mubr.bf16.mxu0 %v622_v16 }
 0x1ce   :  { %v505_v22 = vadd.f32 %v1358_v21, %v1832_v28  ;;  %v496_v23 = vpop.f32.mrb[27].mxu1  ;;  %1400 = vmatmul.mubr.bf16.gmra.mrb[20].mxu0 %v623_v15  ;;  %v598_v25 = vmax.f32 %v502_v18, 0.0 }
 0x1cf   :  { %v497_v24 = vadd.f32 %v1832_v28, %v496_v23  ;;  %v596_v27 = vmax.f32 %v494_v20, 0.0 }
 0x1d0   :  { %v599_v26 = vmax.f32 %v505_v22, 0.0 }
 0x1d1   :  { %v597_v29 = vmax.f32 %v497_v24, 0.0 }
 0x1d2   :  { %v625_v30 = vpack.c.bf16 %v599_v26, %v598_v25 }
 0x1d3   :  { %v624_v32 = vpack.c.bf16 %v597_v29, %v596_v27  ;;  %v1361_v33 = vpop.f32.mrb[28].mxu1 }
 0x1d4   :  { %v518_v34 = vadd.f32 %v1361_v33, %v1832_v28  ;;  %v509_v35 = vpop.f32.mrb[29].mxu1 }
 0x1d5   :  { %v510_v36 = vadd.f32 %v1832_v28, %v509_v35  ;;  %v1362_v37 = vpop.f32.mrb[30].mxu1  ;;  %1403 = vmatprep.mubr.bf16.mxu0 %v624_v32 }
 0x1d6   :  { %v521_v38 = vadd.f32 %v1362_v37, %v1832_v28  ;;  %v512_v39 = vpop.f32.mrb[31].mxu1  ;;  %1404 = vmatmul.mubr.bf16.gmra.mrb[24].mxu0 %v625_v30  ;;  %v602_v41 = vmax.f32 %v518_v34, 0.0 }
 0x1d7   :  { %v513_v40 = vadd.f32 %v1832_v28, %v512_v39  ;;  %v600_v43 = vmax.f32 %v510_v36, 0.0 }
 0x1d8   :  { %v603_v42 = vmax.f32 %v521_v38, 0.0 }
 0x1d9   :  { %v601_v44 = vmax.f32 %v513_v40, 0.0  ;;  %v1869_v40 = vld [vmem:[%s2259_s6] ss:$0 sm:$0xff] }
 0x1da   :  { %v627_v45 = vpack.c.bf16 %v603_v42, %v602_v41 }
 0x1db   :  { %v626_v46 = vpack.c.bf16 %v601_v44, %v600_v43  ;;  %v1365_v47 = vpop.f32.mrb[32].mxu1 }
 0x1dc   :  { %v534_v48 = vadd.f32 %v1365_v47, %v1832_v28  ;;  %v525_v49 = vpop.f32.mrb[33].mxu1 }
 0x1dd   :  { %v526_v50 = vadd.f32 %v1832_v28, %v525_v49  ;;  %v1366_v51 = vpop.f32.mrb[34].mxu1  ;;  %1407 = vmatprep.mubr.bf16.mxu0 %v626_v46 }
 0x1de   :  { %v537_v0 = vadd.f32 %v1366_v51, %v1832_v28  ;;  %v528_v52 = vpop.f32.mrb[35].mxu1  ;;  %1408 = vmatmul.mubr.bf16.gmra.mrb[28].mxu0 %v627_v45  ;;  %v606_v53 = vmax.f32 %v534_v48, 0.0 }
 0x1df   :  { %v529_v31 = vadd.f32 %v1832_v28, %v528_v52  ;;  %v604_v55 = vmax.f32 %v526_v50, 0.0 }
 0x1e0   :  { %v607_v54 = vmax.f32 %v537_v0, 0.0 }
 0x1e1   :  { %v605_v56 = vmax.f32 %v529_v31, 0.0 }
 0x1e2   :  { %v629_v57 = vpack.c.bf16 %v607_v54, %v606_v53 }
 0x1e3   :  { %v628_v58 = vpack.c.bf16 %v605_v56, %v604_v55  ;;  %v1369_v59 = vpop.f32.mrb[36].mxu1 }
 0x1e4   :  { %v550_v60 = vadd.f32 %v1369_v59, %v1832_v28  ;;  %v541_v61 = vpop.f32.mrb[37].mxu1 }
 0x1e5   :  { %v542_v62 = vadd.f32 %v1832_v28, %v541_v61  ;;  %v1370_v63 = vpop.f32.mrb[38].mxu1  ;;  %1411 = vmatprep.mubr.bf16.mxu0 %v628_v58 }
 0x1e6   :  { %v553_v1 = vadd.f32 %v1370_v63, %v1832_v28  ;;  %v544_v2 = vpop.f32.mrb[39].mxu1  ;;  %1412 = vmatmul.mubr.bf16.gmra.mrb[32].mxu0 %v629_v57  ;;  %v610_v4 = vmax.f32 %v550_v60, 0.0 }
 0x1e7   :  { %v545_v3 = vadd.f32 %v1832_v28, %v544_v2  ;;  %v608_v6 = vmax.f32 %v542_v62, 0.0 }
 0x1e8   :  { %v611_v5 = vmax.f32 %v553_v1, 0.0 }
 0x1e9   :  { %v609_v7 = vmax.f32 %v545_v3, 0.0 }
 0x1ea   :  { %v631_v8 = vpack.c.bf16 %v611_v5, %v610_v4 }
 0x1eb   :  { %v630_v9 = vpack.c.bf16 %v609_v7, %v608_v6  ;;  %v1373_v10 = vpop.f32.mrb[40].mxu1 }
 0x1ec   :  { %v566_v11 = vadd.f32 %v1373_v10, %v1832_v28  ;;  %v557_v12 = vpop.f32.mrb[41].mxu1 }
 0x1ed   :  { %v558_v13 = vadd.f32 %v1832_v28, %v557_v12  ;;  %v1374_v14 = vpop.f32.mrb[42].mxu1  ;;  %1415 = vmatprep.mubr.bf16.mxu0 %v630_v9 }
 0x1ee   :  { %v569_v15 = vadd.f32 %v1374_v14, %v1832_v28  ;;  %v560_v16 = vpop.f32.mrb[43].mxu1  ;;  %1416 = vmatmul.mubr.bf16.gmra.mrb[36].mxu0 %v631_v8  ;;  %v614_v18 = vmax.f32 %v566_v11, 0.0 }
 0x1ef   :  { %v561_v17 = vadd.f32 %v1832_v28, %v560_v16  ;;  %v612_v20 = vmax.f32 %v558_v13, 0.0 }
 0x1f0   :  { %v615_v19 = vmax.f32 %v569_v15, 0.0 }
 0x1f1   :  { %v613_v21 = vmax.f32 %v561_v17, 0.0 }
 0x1f2   :  { %v633_v22 = vpack.c.bf16 %v615_v19, %v614_v18 }
 0x1f3   :  { %v632_v23 = vpack.c.bf16 %v613_v21, %v612_v20  ;;  %v1377_v24 = vpop.f32.mrb[44].mxu1 }
 0x1f4   :  { %v582_v25 = vadd.f32 %v1377_v24, %v1832_v28  ;;  %v573_v26 = vpop.f32.mrb[45].mxu1 }
 0x1f5   :  { %v574_v27 = vadd.f32 %v1832_v28, %v573_v26  ;;  %v1378_v29 = vpop.f32.mrb[46].mxu1  ;;  %1419 = vmatprep.mubr.bf16.mxu0 %v632_v23 }
 0x1f6   :  { %v585_v30 = vadd.f32 %v1378_v29, %v1832_v28  ;;  %v576_v32 = vpop.f32.mrb[47].mxu1  ;;  %1420 = vmatmul.mubr.bf16.gmra.mrb[40].mxu0 %v633_v22  ;;  %v618_v34 = vmax.f32 %v582_v25, 0.0 }
 0x1f7   :  { %v577_v33 = vadd.f32 %v1832_v28, %v576_v32  ;;  %v616_v36 = vmax.f32 %v574_v27, 0.0 }
 0x1f8   :  { %v619_v35 = vmax.f32 %v585_v30, 0.0 }
 0x1f9   :  { %v617_v37 = vmax.f32 %v577_v33, 0.0 }
 0x1fa   :  { %v635_v38 = vpack.c.bf16 %v619_v35, %v618_v34 }
 0x1fb   :  { %v634_v39 = vpack.c.bf16 %v617_v37, %v616_v36 }
 0x1fd   :  { %1423 = vmatprep.mubr.bf16.mxu0 %v634_v39 }
 0x1fe   :  { %1424 = vmatmul.mubr.bf16.gmra.mrb[44].mxu0 %v635_v38 }
 0x299   :  { %v1397_v41 = vpop.f32.mrb[16].mxu0 }
 0x29a   :  { %v1872_v42 = vadd.f32 %v1397_v41, %v1869_v40  ;;  %v741_v43 = vpop.f32.mrb[17].mxu0 }
 0x29b   :  { %v1875_v28 = vadd.f32 %v1869_v40, %v741_v43  ;;  %v1398_v44 = vpop.f32.mrb[18].mxu0 }
 0x29c   :  { %v870_v45 = vand.u32 2147483647, %v1872_v42  ;;  %v1879_v46 = vadd.f32 %v1398_v44, %v1869_v40  ;;  %v744_v47 = vpop.f32.mrb[19].mxu0  ;;  %vm1062_vm1 = vcmp.ge.f32.partialorder %v1872_v42, 0.0 }
 0x29d   :  { %v868_v48 = vand.u32 2147483647, %v1875_v28  ;;  %v1883_v49 = vadd.f32 %v1869_v40, %v744_v47  ;;  %vm1060_vm2 = vcmp.ge.f32.partialorder %v1875_v28, 0.0 }
 0x29e   :  { %v902_v50 = vsub.f32 0.0, %v870_v45  ;;  %v871_v51 = vand.u32 2147483647, %v1879_v46  ;;  %vm1063_vm3 = vcmp.ge.f32.partialorder %v1879_v46, 0.0 }
 0x29f   :  { %v900_v0 = vsub.f32 0.0, %v868_v48  ;;  %v869_v52 = vand.u32 2147483647, %v1883_v49  ;;  %vm1061_vm4 = vcmp.ge.f32.partialorder %v1883_v49, 0.0 }
 0x2a0   :  { %v936_v31 = vmul.f32 1.442695, %v902_v50  ;;  %v903_v53 = vsub.f32 0.0, %v871_v51 }
 0x2a1   :  { %v932_v54 = vmul.f32 1.442695, %v900_v0  ;;  %v901_v55 = vsub.f32 0.0, %v869_v52  ;;  %v1401_v56 = vpop.f32.mrb[20].mxu0 }
 0x2a2   :  { %1449 = vpow2.f32 %v936_v31  ;;  %v938_v57 = vmul.f32 1.442695, %v903_v53  ;;  %v1888_v58 = vadd.f32 %v1401_v56, %v1869_v40  ;;  %v757_v59 = vpop.f32.mrb[21].mxu0 }
 0x2a3   :  { %1451 = vpow2.f32 %v932_v54  ;;  %v934_v60 = vmul.f32 1.442695, %v901_v55  ;;  %v1891_v61 = vadd.f32 %v1869_v40, %v757_v59  ;;  %v1402_v62 = vpop.f32.mrb[22].mxu0 }
 0x2a4   :  { %1453 = vpow2.f32 %v938_v57  ;;  %v874_v63 = vand.u32 2147483647, %v1888_v58  ;;  %v1895_v1 = vadd.f32 %v1402_v62, %v1869_v40  ;;  %v760_v2 = vpop.f32.mrb[23].mxu0  ;;  %vm1066_vm5 = vcmp.ge.f32.partialorder %v1888_v58, 0.0 }
 0x2a5   :  { %1455 = vpow2.f32 %v934_v60  ;;  %v872_v3 = vand.u32 2147483647, %v1891_v61  ;;  %v1899_v4 = vadd.f32 %v1869_v40, %v760_v2  ;;  %vm1064_vm6 = vcmp.ge.f32.partialorder %v1891_v61, 0.0 }
 0x2a6   :  { %v906_v5 = vsub.f32 0.0, %v874_v63  ;;  %v875_v6 = vand.u32 2147483647, %v1895_v1  ;;  %vm1067_vm7 = vcmp.ge.f32.partialorder %v1895_v1, 0.0 }
 0x2a7   :  { %v904_v7 = vsub.f32 0.0, %v872_v3  ;;  %v873_v8 = vand.u32 2147483647, %v1899_v4  ;;  %vm1065_vm8 = vcmp.ge.f32.partialorder %v1899_v4, 0.0 }
 0x2a8   :  { %v944_v9 = vmul.f32 1.442695, %v906_v5  ;;  %v907_v10 = vsub.f32 0.0, %v875_v6 }
 0x2a9   :  { %v940_v11 = vmul.f32 1.442695, %v904_v7  ;;  %v905_v12 = vsub.f32 0.0, %v873_v8  ;;  %v1405_v13 = vpop.f32.mrb[24].mxu0 }
 0x2aa   :  { %1457 = vpow2.f32 %v944_v9  ;;  %v946_v14 = vmul.f32 1.442695, %v907_v10  ;;  %v1904_v15 = vadd.f32 %v1405_v13, %v1869_v40  ;;  %v773_v16 = vpop.f32.mrb[25].mxu0 }
 0x2ab   :  { %1459 = vpow2.f32 %v940_v11  ;;  %v942_v17 = vmul.f32 1.442695, %v905_v12  ;;  %v1907_v18 = vadd.f32 %v1869_v40, %v773_v16  ;;  %v1406_v19 = vpop.f32.mrb[26].mxu0 }
 0x2ac   :  { %v1909_v20 = vpop.eup %1449  ;;  %1461 = vpow2.f32 %v946_v14  ;;  %v878_v21 = vand.u32 2147483647, %v1904_v15  ;;  %v1913_v22 = vadd.f32 %v1406_v19, %v1869_v40  ;;  %v776_v23 = vpop.f32.mrb[27].mxu0  ;;  %vm1070_vm9 = vcmp.ge.f32.partialorder %v1904_v15, 0.0 }
 0x2ad   :  { %v1915_v24 = vpop.eup %1451  ;;  %v998_v25 = vadd.f32 1.0, %v1909_v20  ;;  %1463 = vpow2.f32 %v942_v17  ;;  %v876_v26 = vand.u32 2147483647, %v1907_v18  ;;  %v1927_v36 = vadd.f32 %v1869_v40, %v776_v23 }
 0x2ae   :  { %v1919_v27 = vpop.eup %1453  ;;  %v996_v29 = vadd.f32 1.0, %v1915_v24  ;;  %v910_v30 = vsub.f32 0.0, %v878_v21  ;;  %v879_v32 = vand.u32 2147483647, %v1913_v22  ;;  %vm1068_vm10 = vcmp.ge.f32.partialorder %v1907_v18, 0.0 }
 0x2af   :  { %v1923_v33 = vpop.eup %1455  ;;  %1465 = vrcp.f32 %v998_v25  ;;  %v999_v34 = vadd.f32 1.0, %v1919_v27  ;;  %v908_v35 = vsub.f32 0.0, %v876_v26  ;;  %v877_v43 = vand.u32 2147483647, %v1927_v36 }
 0x2b0   :  { %1467 = vrcp.f32 %v996_v29  ;;  %v997_v37 = vadd.f32 1.0, %v1923_v33  ;;  %v952_v38 = vmul.f32 1.442695, %v910_v30  ;;  %v911_v39 = vsub.f32 0.0, %v879_v32 }
 0x2b1   :  { %1469 = vrcp.f32 %v999_v34  ;;  %v948_v41 = vmul.f32 1.442695, %v908_v35  ;;  %v1409_v44 = vpop.f32.mrb[28].mxu0  ;;  %v909_v50 = vsub.f32 0.0, %v877_v43  ;;  %vm1071_vm11 = vcmp.ge.f32.partialorder %v1913_v22, 0.0 }
 0x2b2   :  { %1471 = vrcp.f32 %v997_v37  ;;  %v954_v45 = vmul.f32 1.442695, %v911_v39  ;;  %v1932_v47 = vadd.f32 %v1409_v44, %v1869_v40  ;;  %v789_v48 = vpop.f32.mrb[29].mxu0  ;;  %vm1069_vm12 = vcmp.ge.f32.partialorder %v1927_v36, 0.0 }
 0x2b3   :  { %1473 = vpow2.f32 %v952_v38  ;;  %v1935_v51 = vadd.f32 %v1869_v40, %v789_v48  ;;  %v1410_v0 = vpop.f32.mrb[30].mxu0  ;;  %v950_v5 = vmul.f32 1.442695, %v909_v50 }
 0x2b4   :  { %v1937_v52 = vpop.eup %1457  ;;  %1475 = vpow2.f32 %v948_v41  ;;  %v882_v31 = vand.u32 2147483647, %v1932_v47  ;;  %v1941_v53 = vadd.f32 %v1410_v0, %v1869_v40  ;;  %v792_v54 = vpop.f32.mrb[31].mxu0  ;;  %vm1074_vm13 = vcmp.ge.f32.partialorder %v1932_v47, 0.0 }
 0x2b5   :  { %v1943_v55 = vpop.eup %1459  ;;  %v1002_v56 = vadd.f32 1.0, %v1937_v52  ;;  %1477 = vpow2.f32 %v954_v45  ;;  %v880_v57 = vand.u32 2147483647, %v1935_v51  ;;  %v1959_v12 = vadd.f32 %v1869_v40, %v792_v54 }
 0x2b6   :  { %v1948_v59 = vpop.eup %1461  ;;  %v1000_v60 = vadd.f32 1.0, %v1943_v55  ;;  %v914_v62 = vsub.f32 0.0, %v882_v31  ;;  %v883_v63 = vand.u32 2147483647, %v1941_v53  ;;  %vm1072_vm14 = vcmp.ge.f32.partialorder %v1935_v51, 0.0 }
 0x2b7   :  { %v1953_v2 = vpop.eup %1463  ;;  %1479 = vrcp.f32 %v1002_v56  ;;  %v1003_v3 = vadd.f32 1.0, %v1948_v59  ;;  %v912_v6 = vsub.f32 0.0, %v880_v57  ;;  %v881_v26 = vand.u32 2147483647, %v1959_v12 }
 0x2b8   :  { %1481 = vrcp.f32 %v1000_v60  ;;  %v1001_v7 = vadd.f32 1.0, %v1953_v2  ;;  %v960_v8 = vmul.f32 1.442695, %v914_v62  ;;  %v915_v9 = vsub.f32 0.0, %v883_v63 }
 0x2b9   :  { %v1466_v10 = vpop.eup %1465  ;;  %1483 = vrcp.f32 %v1003_v3  ;;  %v956_v11 = vmul.f32 1.442695, %v912_v6  ;;  %v1413_v13 = vpop.f32.mrb[32].mxu0  ;;  %v913_v42 = vsub.f32 0.0, %v881_v26  ;;  %vm1075_vm15 = vcmp.ge.f32.partialorder %v1941_v53, 0.0 }
 0x2ba   :  { %v1468_v14 = vpop.eup %1467  ;;  %v1094_v16 = vmul.f32 %v1466_v10, %v1909_v20  ;;  %1485 = vrcp.f32 %v1001_v7  ;;  %v962_v17 = vmul.f32 1.442695, %v915_v9  ;;  %v1963_v19 = vadd.f32 %v1413_v13, %v1869_v40  ;;  %v805_v21 = vpop.f32.mrb[33].mxu0 }
 0x2bb   :  { %v1470_v23 = vpop.eup %1469  ;;  %v1092_v25 = vmul.f32 %v1468_v14, %v1915_v24  ;;  %1487 = vpow2.f32 %v950_v5  ;;  %v1414_v29 = vpop.f32.mrb[34].mxu0  ;;  %v958_v45 = vmul.f32 1.442695, %v913_v42  ;;  %v2002_v50 = vadd.f32 %v1869_v40, %v805_v21 }
 0x2bc   :  { %v1472_v30 = vpop.eup %1471  ;;  %v1126_v32 = vsel %vm1062_vm1, %v1466_v10, %v1094_v16  ;;  %v1095_v20 = vmul.f32 %v1470_v23, %v1919_v27  ;;  %1489 = vpow2.f32 %v960_v8  ;;  %v886_v34 = vand.u32 2147483647, %v1963_v19  ;;  %v808_v35 = vpop.f32.mrb[35].mxu0 }
 0x2bd   :  { %v1972_v37 = vpop.eup %1473  ;;  %1158 = vst [vmem:[%s2260_s7 + $0x10] sm:$0xff] %v1126_v32  ;;  %v1124_v24 = vsel %vm1060_vm2, %v1468_v14, %v1092_v25  ;;  %v1093_v38 = vmul.f32 %v1472_v30, %v1923_v33  ;;  %1491 = vpow2.f32 %v956_v11  ;;  %v2006_v49 = vadd.f32 %v1414_v29, %v1869_v40 }
 0x2be   :  { %v1980_v39 = vpop.eup %1475  ;;  %1156 = vst [vmem:[%s2260_s7] sm:$0xff] %v1124_v24  ;;  %v1127_v27 = vsel %vm1063_vm3, %v1470_v23, %v1095_v20  ;;  %v1006_v41 = vadd.f32 1.0, %v1972_v37  ;;  %1493 = vpow2.f32 %v962_v17  ;;  %v918_v43 = vsub.f32 0.0, %v886_v34 }
 0x2bf   :  { %v1988_v44 = vpop.eup %1477  ;;  %1159 = vst [vmem:[%s2260_s7 + $0x18] sm:$0xff] %v1127_v27  ;;  %v1125_v28 = vsel %vm1061_vm4, %v1472_v30, %v1093_v38  ;;  %v1004_v33 = vadd.f32 1.0, %v1980_v39  ;;  %v2009_v31 = vadd.f32 %v1869_v40, %v808_v35  ;;  %v884_v60 = vand.u32 2147483647, %v2002_v50 }
 0x2c0   :  { %1157 = vst [vmem:[%s2260_s7 + $0x8] sm:$0xff] %v1125_v28  ;;  %1495 = vrcp.f32 %v1006_v41  ;;  %v1007_v46 = vadd.f32 1.0, %v1988_v44  ;;  %v968_v48 = vmul.f32 1.442695, %v918_v43  ;;  %v887_v5 = vand.u32 2147483647, %v2006_v49 }
 0x2c1   :  { %v1480_v0 = vpop.eup %1479  ;;  %1497 = vrcp.f32 %v1004_v33  ;;  %v1417_v54 = vpop.f32.mrb[36].mxu0  ;;  %v916_v9 = vsub.f32 0.0, %v884_v60  ;;  %v885_v58 = vand.u32 2147483647, %v2009_v31  ;;  %vm1073_vm0 = vcmp.ge.f32.partialorder %v1959_v12, 0.0 }
 0x2c2   :  { %v1482_v56 = vpop.eup %1481  ;;  %v1098_v57 = vmul.f32 %v1480_v0, %v1937_v52  ;;  %1499 = vrcp.f32 %v1007_v46  ;;  %v821_v62 = vpop.f32.mrb[37].mxu0  ;;  %v919_v14 = vsub.f32 0.0, %v887_v5  ;;  %v2055_v30 = vadd.f32 %v1417_v54, %v1869_v40 }
 0x2c3   :  { %v1484_v63 = vpop.eup %1483  ;;  %v1096_v3 = vmul.f32 %v1482_v56, %v1943_v55  ;;  %1501 = vpow2.f32 %v958_v45  ;;  %v1418_v6 = vpop.f32.mrb[38].mxu0  ;;  %v964_v61 = vmul.f32 1.442695, %v916_v9  ;;  %v917_v26 = vsub.f32 0.0, %v885_v58 }
 0x2c4   :  { %v1486_v7 = vpop.eup %1485  ;;  %v1130_v8 = vsel %vm1066_vm5, %v1480_v0, %v1098_v57  ;;  %v1099_v52 = vmul.f32 %v1484_v63, %v1948_v59  ;;  %1503 = vpow2.f32 %v968_v48  ;;  %v2020_v10 = vpop.f32.mrb[39].mxu0  ;;  %v970_v25 = vmul.f32 1.442695, %v919_v14 }
 0x2c5   :  { %v2022_v11 = vpop.eup %1487  ;;  %1162 = vst [vmem:[%s2260_s7 + $0x30] sm:$0xff] %v1130_v8  ;;  %v1128_v55 = vsel %vm1064_vm6, %v1482_v56, %v1096_v3  ;;  %v1097_v13 = vmul.f32 %v1486_v7, %v1953_v2  ;;  %v2058_v32 = vadd.f32 %v1869_v40, %v821_v62  ;;  %v966_v20 = vmul.f32 1.442695, %v917_v26 }
 0x2c6   :  { %v2031_v16 = vpop.eup %1489  ;;  %1160 = vst [vmem:[%s2260_s7 + $0x20] sm:$0xff] %v1128_v55  ;;  %v1131_v59 = vsel %vm1067_vm7, %v1484_v63, %v1099_v52  ;;  %v1005_v17 = vadd.f32 1.0, %v2022_v11  ;;  %v2062_v34 = vadd.f32 %v1418_v6, %v1869_v40  ;;  %v890_v38 = vand.u32 2147483647, %v2055_v30 }
 0x2c7   :  { %v2040_v21 = vpop.eup %1491  ;;  %1163 = vst [vmem:[%s2260_s7 + $0x38] sm:$0xff] %v1131_v59  ;;  %v1129_v2 = vsel %vm1065_vm8, %v1486_v7, %v1097_v13  ;;  %v1010_v23 = vadd.f32 1.0, %v2031_v16  ;;  %v888_v42 = vand.u32 2147483647, %v2058_v32  ;;  %v2095_v6 = vadd.f32 %v1869_v40, %v2020_v10 }
 0x2c8   :  { %v2048_v1 = vpop.eup %1493  ;;  %1161 = vst [vmem:[%s2260_s7 + $0x28] sm:$0xff] %v1129_v2  ;;  %1505 = vrcp.f32 %v1005_v17  ;;  %v1008_v29 = vadd.f32 1.0, %v2040_v21  ;;  %v891_v28 = vand.u32 2147483647, %v2062_v34  ;;  %v922_v48 = vsub.f32 0.0, %v890_v38 }
 0x2c9   :  { %1507 = vrcp.f32 %v1010_v23  ;;  %v1011_v4 = vadd.f32 1.0, %v2048_v1  ;;  %v1421_v35 = vpop.f32.mrb[40].mxu0  ;;  %v920_v0 = vsub.f32 0.0, %v888_v42  ;;  %v889_v9 = vand.u32 2147483647, %v2095_v6 }
 0x2ca   :  { %v1496_v24 = vpop.eup %1495  ;;  %1509 = vrcp.f32 %v1008_v29  ;;  %v837_v27 = vpop.f32.mrb[41].mxu0  ;;  %v923_v60 = vsub.f32 0.0, %v891_v28  ;;  %v976_v3 = vmul.f32 1.442695, %v922_v48  ;;  %v2098_v7 = vadd.f32 %v1421_v35, %v1869_v40 }
 0x2cb   :  { %v1498_v41 = vpop.eup %1497  ;;  %v1102_v43 = vmul.f32 %v1496_v24, %v1972_v37  ;;  %1511 = vrcp.f32 %v1011_v4  ;;  %v1422_v33 = vpop.f32.mrb[42].mxu0  ;;  %v972_v5 = vmul.f32 1.442695, %v920_v0  ;;  %v2103_v22 = vadd.f32 %v1869_v40, %v837_v27 }
 0x2cc   :  { %v1500_v45 = vpop.eup %1499  ;;  %v1100_v46 = vmul.f32 %v1498_v41, %v1980_v39  ;;  %1513 = vpow2.f32 %v964_v61  ;;  %v840_v54 = vpop.f32.mrb[43].mxu0  ;;  %v978_v18 = vmul.f32 1.442695, %v923_v60  ;;  %v894_v10 = vand.u32 2147483647, %v2098_v7 }
 0x2cd   :  { %v2071_v56 = vpop.eup %1501  ;;  %v1134_v57 = vsel %vm1070_vm9, %v1496_v24, %v1102_v43  ;;  %v1103_v37 = vmul.f32 %v1500_v45, %v1988_v44  ;;  %1515 = vpow2.f32 %v970_v25  ;;  %v892_v58 = vand.u32 2147483647, %v2103_v22 }
 0x2ce   :  { %v2076_v62 = vpop.eup %1503  ;;  %1166 = vst [vmem:[%s2260_s7 + $0x50] sm:$0xff] %v1134_v57  ;;  %v1132_v39 = vsel %vm1068_vm10, %v1498_v41, %v1100_v46  ;;  %v1009_v63 = vadd.f32 1.0, %v2071_v56  ;;  %1517 = vpow2.f32 %v966_v20  ;;  %v2111_v59 = vadd.f32 %v1422_v33, %v1869_v40 }
 0x2cf   :  { %1164 = vst [vmem:[%s2260_s7 + $0x40] sm:$0xff] %v1132_v39  ;;  %v1135_v15 = vsel %vm1071_vm11, %v1500_v45, %v1103_v37  ;;  %v1014_v44 = vadd.f32 1.0, %v2076_v62  ;;  %v921_v23 = vsub.f32 0.0, %v889_v9  ;;  %v926_v25 = vsub.f32 0.0, %v894_v10 }
 0x2d0   :  { %1167 = vst [vmem:[%s2260_s7 + $0x58] sm:$0xff] %v1135_v15  ;;  %1519 = vrcp.f32 %v1009_v63  ;;  %v924_v20 = vsub.f32 0.0, %v892_v58  ;;  %v2120_v35 = vadd.f32 %v1869_v40, %v840_v54  ;;  %v895_v47 = vand.u32 2147483647, %v2111_v59 }
 0x2d1   :  { %1521 = vrcp.f32 %v1014_v44  ;;  %v1425_v8 = vpop.f32.mrb[44].mxu0  ;;  %v974_v38 = vmul.f32 1.442695, %v921_v23  ;;  %v984_v41 = vmul.f32 1.442695, %v926_v25  ;;  %vm1078_vm1 = vcmp.ge.f32.partialorder %v1963_v19, 0.0 }
 0x2d2   :  { %v1506_v52 = vpop.eup %1505  ;;  %1523 = vpow2.f32 %v976_v3  ;;  %v853_v55 = vpop.f32.mrb[45].mxu0  ;;  %v980_v28 = vmul.f32 1.442695, %v924_v20  ;;  %v927_v33 = vsub.f32 0.0, %v895_v47  ;;  %v893_v45 = vand.u32 2147483647, %v2120_v35 }
 0x2d3   :  { %v1508_v13 = vpop.eup %1507  ;;  %v1101_v14 = vmul.f32 %v1506_v52, %v2022_v11  ;;  %1525 = vpow2.f32 %v972_v5  ;;  %v2113_v17 = vpop.f32.mrb[46].mxu0  ;;  %v2153_v48 = vadd.f32 %v1425_v8, %v1869_v40  ;;  %v2156_v0 = vadd.f32 %v1869_v40, %v853_v55 }
 0x2d4   :  { %v1510_v61 = vpop.eup %1509  ;;  %v1106_v2 = vmul.f32 %v1508_v13, %v2031_v16  ;;  %1527 = vpow2.f32 %v978_v18  ;;  %v856_v26 = vpop.f32.mrb[47].mxu0  ;;  %v986_v37 = vmul.f32 1.442695, %v927_v33  ;;  %v925_v60 = vsub.f32 0.0, %v893_v45 }
 0x2d5   :  { %v1512_v29 = vpop.eup %1511  ;;  %v1133_v4 = vsel %vm1069_vm12, %v1506_v52, %v1101_v14  ;;  %v1104_v11 = vmul.f32 %v1510_v61, %v2040_v21  ;;  %1529 = vpow2.f32 %v974_v38  ;;  %v898_v12 = vand.u32 2147483647, %v2153_v48 }
 0x2d6   :  { %v2122_v24 = vpop.eup %1513  ;;  %1165 = vst [vmem:[%s2260_s7 + $0x48] sm:$0xff] %v1133_v4  ;;  %v1138_v16 = vsel %vm1074_vm13, %v1508_v13, %v1106_v2  ;;  %v1107_v36 = vmul.f32 %v1512_v29, %v2048_v1  ;;  %v982_v5 = vmul.f32 1.442695, %v925_v60  ;;  %v896_v52 = vand.u32 2147483647, %v2156_v0 }
 0x2d7   :  { %v2131_v42 = vpop.eup %1515  ;;  %1170 = vst [vmem:[%s2260_s7 + $0x70] sm:$0xff] %v1138_v16  ;;  %v1136_v21 = vsel %vm1072_vm14, %v1510_v61, %v1104_v11  ;;  %v1012_v27 = vadd.f32 1.0, %v2122_v24  ;;  %v2180_v10 = vadd.f32 %v2113_v17, %v1869_v40  ;;  %v2183_v55 = vadd.f32 %v1869_v40, %v856_v26 }
 0x2d8   :  { %v2140_v43 = vpop.eup %1517  ;;  %1168 = vst [vmem:[%s2260_s7 + $0x60] sm:$0xff] %v1136_v21  ;;  %v1139_v53 = vsel %vm1075_vm15, %v1512_v29, %v1107_v36  ;;  %v1015_v1 = vadd.f32 1.0, %v2131_v42  ;;  %v928_v13 = vsub.f32 0.0, %v896_v52  ;;  %vm1076_vm2 = vcmp.ge.f32.partialorder %v2002_v50, 0.0 }
 0x2d9   :  { %1171 = vst [vmem:[%s2260_s7 + $0x78] sm:$0xff] %v1139_v53  ;;  %1531 = vrcp.f32 %v1012_v27  ;;  %v1013_v51 = vadd.f32 1.0, %v2140_v43  ;;  %v899_v58 = vand.u32 2147483647, %v2180_v10  ;;  %v897_v61 = vand.u32 2147483647, %v2183_v55 }
 0x2da   :  { %v1520_v46 = vpop.eup %1519  ;;  %1533 = vrcp.f32 %v1015_v1  ;;  %v988_v25 = vmul.f32 1.442695, %v928_v13  ;;  %vm1079_vm3 = vcmp.ge.f32.partialorder %v2006_v49, 0.0  ;;  %vm1077_vm4 = vcmp.ge.f32.partialorder %v2009_v31, 0.0 }
 0x2db   :  { %v1522_v54 = vpop.eup %1521  ;;  %v1105_v57 = vmul.f32 %v1520_v46, %v2071_v56  ;;  %1535 = vrcp.f32 %v1013_v51  ;;  %v931_v17 = vsub.f32 0.0, %v899_v58  ;;  %v929_v11 = vsub.f32 0.0, %v897_v61 }
 0x2dc   :  { %v2159_v39 = vpop.eup %1523  ;;  %v1110_v63 = vmul.f32 %v1522_v54, %v2076_v62  ;;  %1537 = vpow2.f32 %v984_v41  ;;  %v930_v62 = vsub.f32 0.0, %v898_v12  ;;  %vm1082_vm5 = vcmp.ge.f32.partialorder %v2055_v30, 0.0 }
 0x2dd   :  { %v2164_v3 = vpop.eup %1525  ;;  %v1137_v15 = vsel %vm1073_vm0, %v1520_v46, %v1105_v57  ;;  %v1018_v44 = vadd.f32 1.0, %v2159_v39  ;;  %1539 = vpow2.f32 %v980_v28  ;;  %v994_v38 = vmul.f32 1.442695, %v931_v17 }
 0x2de   :  { %v2167_v56 = vpop.eup %1527  ;;  %1169 = vst [vmem:[%s2260_s7 + $0x68] sm:$0xff] %v1137_v15  ;;  %v1142_v18 = vsel %vm1078_vm1, %v1522_v54, %v1110_v63  ;;  %v1016_v19 = vadd.f32 1.0, %v2164_v3  ;;  %1541 = vpow2.f32 %v986_v37  ;;  %v992_v9 = vmul.f32 1.442695, %v930_v62 }
 0x2df   :  { %1174 = vst [vmem:[%s2260_s7 + $0x90] sm:$0xff] %v1142_v18  ;;  %1543 = vrcp.f32 %v1018_v44  ;;  %v1019_v8 = vadd.f32 1.0, %v2167_v56  ;;  %v1530_v14 = vpop.eup %1529  ;;  %v990_v41 = vmul.f32 1.442695, %v929_v11  ;;  %vm1080_vm6 = vcmp.ge.f32.partialorder %v2058_v32, 0.0 }
 0x2e0   :  { %1545 = vrcp.f32 %v1016_v19  ;;  %v1017_v23 = vadd.f32 1.0, %v1530_v14  ;;  %vm1083_vm7 = vcmp.ge.f32.partialorder %v2062_v34, 0.0  ;;  %vm1081_vm8 = vcmp.ge.f32.partialorder %v2095_v6, 0.0 }
 0x2e1   :  { %1547 = vrcp.f32 %v1019_v8  ;;  %vm1086_vm9 = vcmp.ge.f32.partialorder %v2098_v7, 0.0  ;;  %vm1084_vm10 = vcmp.ge.f32.partialorder %v2103_v22, 0.0  ;;  %vm1087_vm11 = vcmp.ge.f32.partialorder %v2111_v59, 0.0 }
 0x2e2   :  { %1549 = vpow2.f32 %v982_v5  ;;  %vm1085_vm12 = vcmp.ge.f32.partialorder %v2120_v35, 0.0  ;;  %vm1090_vm13 = vcmp.ge.f32.partialorder %v2153_v48, 0.0  ;;  %vm1088_vm14 = vcmp.ge.f32.partialorder %v2156_v0, 0.0 }
 0x2e3   :  { %v1532_v2 = vpop.eup %1531  ;;  %1551 = vpow2.f32 %v992_v9  ;;  %vm1091_vm15 = vcmp.ge.f32.partialorder %v2180_v10, 0.0  ;;  %vm1089_vm0 = vcmp.ge.f32.partialorder %v2183_v55, 0.0 }
 0x2e4   :  { %v1534_v29 = vpop.eup %1533  ;;  %v1108_v4 = vmul.f32 %v1532_v2, %v2122_v24  ;;  %1553 = vrcp.f32 %v1017_v23 }
 0x2e5   :  { %v1536_v20 = vpop.eup %1535  ;;  %v1111_v40 = vmul.f32 %v1534_v29, %v2131_v42  ;;  %1555 = vpow2.f32 %v988_v25 }
 0x2e6   :  { %v1538_v26 = vpop.eup %1537  ;;  %v1140_v16 = vsel %vm1076_vm2, %v1532_v2, %v1108_v4  ;;  %v1109_v36 = vmul.f32 %v1536_v20, %v2140_v43  ;;  %1557 = vpow2.f32 %v994_v38 }
 0x2e7   :  { %v1540_v21 = vpop.eup %1539  ;;  %1172 = vst [vmem:[%s2260_s7 + $0x80] sm:$0xff] %v1140_v16  ;;  %v1143_v24 = vsel %vm1079_vm3, %v1534_v29, %v1111_v40  ;;  %v1022_v50 = vadd.f32 1.0, %v1538_v26 }
 0x2e8   :  { %v1542_v27 = vpop.eup %1541  ;;  %1175 = vst [vmem:[%s2260_s7 + $0x98] sm:$0xff] %v1143_v24  ;;  %v1141_v49 = vsel %vm1077_vm4, %v1536_v20, %v1109_v36  ;;  %v1020_v42 = vadd.f32 1.0, %v1540_v21 }
 0x2e9   :  { %v1544_v47 = vpop.eup %1543  ;;  %1173 = vst [vmem:[%s2260_s7 + $0x88] sm:$0xff] %v1141_v49  ;;  %1559 = vrcp.f32 %v1022_v50  ;;  %v1023_v43 = vadd.f32 1.0, %v1542_v27 }
 0x2ea   :  { %v1546_v53 = vpop.eup %1545  ;;  %v1114_v31 = vmul.f32 %v1544_v47, %v2159_v39  ;;  %1561 = vrcp.f32 %v1020_v42 }
 0x2eb   :  { %v1548_v1 = vpop.eup %1547  ;;  %v1112_v28 = vmul.f32 %v1546_v53, %v2164_v3  ;;  %1563 = vrcp.f32 %v1023_v43 }
 0x2ec   :  { %v1550_v51 = vpop.eup %1549  ;;  %v1146_v33 = vsel %vm1082_vm5, %v1544_v47, %v1114_v31  ;;  %v1115_v45 = vmul.f32 %v1548_v1, %v2167_v56  ;;  %1565 = vpow2.f32 %v990_v41 }
 0x2ed   :  { %v1552_v46 = vpop.eup %1551  ;;  %1178 = vst [vmem:[%s2260_s7 + $0xb0] sm:$0xff] %v1146_v33  ;;  %v1144_v54 = vsel %vm1080_vm6, %v1546_v53, %v1112_v28  ;;  %v1021_v57 = vadd.f32 1.0, %v1550_v51 }
 0x2ee   :  { %1176 = vst [vmem:[%s2260_s7 + $0xa0] sm:$0xff] %v1144_v54  ;;  %v1147_v30 = vsel %vm1083_vm7, %v1548_v1, %v1115_v45  ;;  %v1026_v37 = vadd.f32 1.0, %v1552_v46  ;;  %v1554_v60 = vpop.eup %1553 }
 0x2ef   :  { %1179 = vst [vmem:[%s2260_s7 + $0xb8] sm:$0xff] %v1147_v30  ;;  %1567 = vrcp.f32 %v1021_v57  ;;  %v1556_v32 = vpop.eup %1555  ;;  %v1113_v39 = vmul.f32 %v1554_v60, %v1530_v14 }
 0x2f0   :  { %1569 = vrcp.f32 %v1026_v37  ;;  %v1024_v63 = vadd.f32 1.0, %v1556_v32  ;;  %v1558_v34 = vpop.eup %1557 }
 0x2f1   :  { %v1145_v12 = vsel %vm1081_vm8, %v1554_v60, %v1113_v39  ;;  %v1027_v15 = vadd.f32 1.0, %v1558_v34 }
 0x2f2   :  { %1177 = vst [vmem:[%s2260_s7 + $0xa8] sm:$0xff] %v1145_v12  ;;  %1571 = vrcp.f32 %v1024_v63 }
 0x2f3   :  { %v1560_v3 = vpop.eup %1559  ;;  %1573 = vrcp.f32 %v1027_v15 }
 0x2f4   :  { %v1562_v44 = vpop.eup %1561  ;;  %v1118_v5 = vmul.f32 %v1560_v3, %v1538_v26 }
 0x2f5   :  { %v1564_v56 = vpop.eup %1563  ;;  %v1116_v18 = vmul.f32 %v1562_v44, %v1540_v21 }
 0x2f6   :  { %v1566_v19 = vpop.eup %1565  ;;  %v1150_v62 = vsel %vm1086_vm9, %v1560_v3, %v1118_v5  ;;  %v1119_v6 = vmul.f32 %v1564_v56, %v1542_v27 }
 0x2f7   :  { %1182 = vst [vmem:[%s2260_s7 + $0xd0] sm:$0xff] %v1150_v62  ;;  %v1148_v8 = vsel %vm1084_vm10, %v1562_v44, %v1116_v18  ;;  %v1025_v52 = vadd.f32 1.0, %v1566_v19 }
 0x2f8   :  { %1180 = vst [vmem:[%s2260_s7 + $0xc0] sm:$0xff] %v1148_v8  ;;  %v1151_v7 = vsel %vm1087_vm11, %v1564_v56, %v1119_v6 }
 0x2f9   :  { %v1568_v9 = vpop.eup %1567  ;;  %1183 = vst [vmem:[%s2260_s7 + $0xd8] sm:$0xff] %v1151_v7  ;;  %1575 = vrcp.f32 %v1025_v52 }
 0x2fa   :  { %v1570_v22 = vpop.eup %1569  ;;  %v1117_v13 = vmul.f32 %v1568_v9, %v1550_v51 }
 0x2fb   :  { %v1122_v14 = vmul.f32 %v1570_v22, %v1552_v46 }
 0x2fc   :  { %v1149_v58 = vsel %vm1085_vm12, %v1568_v9, %v1117_v13  ;;  %v1572_v59 = vpop.eup %1571 }
 0x2fd   :  { %1181 = vst [vmem:[%s2260_s7 + $0xc8] sm:$0xff] %v1149_v58  ;;  %v1154_v61 = vsel %vm1090_vm13, %v1570_v22, %v1122_v14  ;;  %v1120_v2 = vmul.f32 %v1572_v59, %v1556_v32  ;;  %v1574_v23 = vpop.eup %1573 }
 0x2fe   :  { %1186 = vst [vmem:[%s2260_s7 + $0xf0] sm:$0xff] %v1154_v61  ;;  %v1123_v35 = vmul.f32 %v1574_v23, %v1558_v34 }
 0x2ff   :  { %v1152_v25 = vsel %vm1088_vm14, %v1572_v59, %v1120_v2 }
 0x300   :  { %1184 = vst [vmem:[%s2260_s7 + $0xe0] sm:$0xff] %v1152_v25  ;;  %v1155_v48 = vsel %vm1091_vm15, %v1574_v23, %v1123_v35 }
 0x301   :  { %1187 = vst [vmem:[%s2260_s7 + $0xf8] sm:$0xff] %v1155_v48 }
 0x303   :  { %v1576_v29 = vpop.eup %1575 }
 0x304   :  { %v1121_v4 = vmul.f32 %v1576_v29, %v1566_v19 }
 0x306   :  { %v1153_v17 = vsel %vm1089_vm0, %v1576_v29, %v1121_v4 }
 0x307   :  { %1185 = vst [vmem:[%s2260_s7 + $0xe8] sm:$0xff] %v1153_v17 }

</bundles_post_ra>
